<compile_context>
chip_gen: v6e
topology: v6e:2x2x1
jax: 0.10.0
libtpu: 0.0.40
codegen_flags: <defaults>
</compile_context>

<pallas_src>
import functools

import jax
import jax.numpy as jnp
from jax.experimental import pallas as pl
from jax.experimental.pallas import tpu as pltpu

ORDER = 2  # static "order" argument of ExponentialPW.__init__

LANE_C = 1024        # lane-dense last dim (multiple of 128 -> unmasked stores)
TARGET_ROWS = 1024   # ~4 MiB per f32 block buffer at LANE_C=1024
                     # (in + out, double-buffered -> ~16 MiB VMEM, fits all gens)


def _exponential_pw_kernel(spw_ref, b_ref, x_ref, o_ref, *, order):
    # spw_ref / b_ref are (1,) scalars in SMEM (softplus already applied in the
    # wrapper); x_ref / o_ref are big lane-dense VMEM tiles.
    spw = spw_ref[0]
    b = b_ref[0]
    # exp(x)**order == exp(order * x)  (order is a static Python int)
    o_ref[...] = spw * jnp.exp(order * x_ref[...]) + b


def exponential_pw(x, weight, bias, *, order=ORDER):
    """x: any-shape float array, weight/bias: (1,) arrays. Returns same shape as x."""
    orig_shape = x.shape
    dtype = x.dtype
    total = x.size

    # Hoist the (numerically stable) softplus out of the kernel: scalar cost.
    sp_w = jax.nn.softplus(weight).astype(dtype).reshape((1,))
    b = bias.astype(dtype).reshape((1,))

    # Flatten to a lane-dense 2-D slab (padded_rows, LANE_C).
    rows = pl.cdiv(total, LANE_C)
    tile_rows = min(TARGET_ROWS, ((rows + 7) // 8) * 8)       # multiple of 8
    padded_rows = ((rows + tile_rows - 1) // tile_rows) * tile_rows
    padded_total = padded_rows * LANE_C

    flat = x.reshape(-1)
    if padded_total != total:
        flat = jnp.pad(flat, (0, padded_total - total))
    x2d = flat.reshape(padded_rows, LANE_C)

    grid = (padded_rows // tile_rows,)
    kernel = functools.partial(_exponential_pw_kernel, order=order)

    itemsize = jnp.dtype(dtype).itemsize
    out2d = pl.pallas_call(
        kernel,
        out_shape=jax.ShapeDtypeStruct((padded_rows, LANE_C), dtype),
        grid_spec=pltpu.PrefetchScalarGridSpec(
            num_scalar_prefetch=0,
            grid=grid,
            in_specs=[
                pl.BlockSpec(memory_space=pltpu.MemorySpace.SMEM),    # softplus(w)
                pl.BlockSpec(memory_space=pltpu.MemorySpace.SMEM),    # bias
                pl.BlockSpec((tile_rows, LANE_C), lambda i: (i, 0)),  # x tile
            ],
            out_specs=pl.BlockSpec((tile_rows, LANE_C), lambda i: (i, 0)),
        ),
        compiler_params=pltpu.CompilerParams(
            dimension_semantics=("parallel",),
            vmem_limit_bytes=48 << 20,   # headroom for 4 MiB x 2 bufs x (in+out)
        ),
        cost_estimate=pl.CostEstimate(
            flops=2 * padded_total,
            transcendentals=padded_total,
            bytes_accessed=2 * padded_total * itemsize,
        ),
    )(sp_w, b, x2d)

    return out2d.reshape(-1)[:total].reshape(orig_shape)


def exponential_pw_ref(x, weight, bias, *, order=ORDER):
    # Pure-JAX reference mirroring the PyTorch forward exactly.
    weights = jax.nn.softplus(weight)[:, None]          # (1, 1)
    return weights * jnp.exp(x) ** order + bias         # bias (1,) broadcasts


if __name__ == "__main__":
    key = jax.random.PRNGKey(0)
    k1, k2 = jax.random.split(key)

    # Case 1: lane-aligned small shape, default (zero) parameters.
    x1 = jax.random.normal(k1, (16, 128), dtype=jnp.float32) * 0.1
    w0 = jnp.zeros((1,), dtype=jnp.float32)   # nn.Parameter(torch.full((1,), 0.0))
    b0 = jnp.zeros((1,), dtype=jnp.float32)
    out1 = jax.block_until_ready(exponential_pw(x1, w0, b0))
    ref1 = exponential_pw_ref(x1, w0, b0)
    assert out1.shape == ref1.shape and out1.dtype == ref1.dtype
    assert jnp.allclose(out1, ref1, rtol=1e-5, atol=1e-5), "mismatch (case 1)"

    # Case 2: non-aligned shape (exercises the padding/trim path) and
    # non-trivial scalar parameters.
    x2 = jax.random.normal(k2, (7, 130), dtype=jnp.float32) * 0.2
    w1 = jnp.array([0.3], dtype=jnp.float32)
    b1 = jnp.array([-0.1], dtype=jnp.float32)
    out2 = jax.block_until_ready(exponential_pw(x2, w1, b1))
    ref2 = exponential_pw_ref(x2, w1, b1)
    assert out2.shape == ref2.shape and out2.dtype == ref2.dtype
    assert jnp.allclose(out2, ref2, rtol=1e-5, atol=1e-5), "mismatch (case 2)"

    print("KERNEL_OK")
</pallas_src>

<mosaic_0001>
module attributes {stable_mosaic.version = 11 : i64} {
  func.func @_exponential_pw_kernel(%arg0: i32, %arg1: memref<1xf32, #tpu.memory_space<smem>>, %arg2: memref<1xf32, #tpu.memory_space<smem>>, %arg3: memref<8x1024xf32, #tpu.memory_space<vmem>>, %arg4: memref<8x1024xf32, #tpu.memory_space<vmem>>) attributes {dimension_semantics = [#tpu.dimension_semantics<parallel>], iteration_bounds = array<i64: 1>, scalar_prefetch = 0 : i64, scratch_operands = 0 : i64, tpu.core_type = #tpu.core_type<tc>, window_params = [{transform_indices = @transform_0, window_bounds = array<i64: 1>}, {transform_indices = @transform_1, window_bounds = array<i64: 1>}, {transform_indices = @transform_2, window_bounds = array<i64: 8, 1024>}, {transform_indices = @transform_3, window_bounds = array<i64: 8, 1024>}]} {
    %c0 = arith.constant 0 : index
    %0 = memref.load %arg1[%c0] : memref<1xf32, #tpu.memory_space<smem>>
    %c0_0 = arith.constant 0 : index
    %1 = memref.load %arg2[%c0_0] : memref<1xf32, #tpu.memory_space<smem>>
    %c0_1 = arith.constant 0 : index
    %c0_2 = arith.constant 0 : index
    %2 = vector.load %arg3[%c0_1, %c0_2] : memref<8x1024xf32, #tpu.memory_space<vmem>>, vector<8x1024xf32>
    %cst = arith.constant 2.000000e+00 : f32
    %3 = vector.broadcast %cst : f32 to vector<8x1024xf32>
    %4 = arith.mulf %3, %2 : vector<8x1024xf32>
    %5 = math.exp %4 : vector<8x1024xf32>
    %6 = vector.broadcast %0 : f32 to vector<8x1024xf32>
    %7 = arith.mulf %6, %5 : vector<8x1024xf32>
    %8 = vector.broadcast %1 : f32 to vector<8x1024xf32>
    %9 = arith.addf %7, %8 : vector<8x1024xf32>
    %c0_3 = arith.constant 0 : index
    %c0_4 = arith.constant 0 : index
    %10 = vector.load %arg4[%c0_3, %c0_4] : memref<8x1024xf32, #tpu.memory_space<vmem>>, vector<8x1024xf32>
    tpu.vector_store %arg4[%c0_3, %c0_4], %9 {strides = array<i32>} : memref<8x1024xf32, #tpu.memory_space<vmem>>, vector<8x1024xf32>,
    return
  }
  func.func @transform_0(%arg0: i32) -> i32 {
    %c0_i32 = arith.constant 0 : i32
    %c0_i32_0 = arith.constant 0 : i32
    return %c0_i32 : i32
  }
  func.func @transform_1(%arg0: i32) -> i32 {
    %c0_i32 = arith.constant 0 : i32
    %c0_i32_0 = arith.constant 0 : i32
    return %c0_i32 : i32
  }
  func.func @transform_2(%arg0: i32) -> (i32, i32) {
    %c0_i32 = arith.constant 0 : i32
    %c0_i32_0 = arith.constant 0 : i32
    return %arg0, %c0_i32 : i32, i32
  }
  func.func @transform_3(%arg0: i32) -> (i32, i32) {
    %c0_i32 = arith.constant 0 : i32
    %c0_i32_0 = arith.constant 0 : i32
    return %arg0, %c0_i32 : i32, i32
  }
}

</mosaic_0001>

<bundles_post_ra>
// kernel: tpu_custom_call.1
= control target key start
LH: loop header
LB: loop body
LE: loop exit
PB: predicated region body
PF: predicated region fallthrough
CT: control target
= control target key end

     0   :  { %10 = vsyncpa [#allocation5], 0  ;;  %s200_s0 = inlined_call_operand.<no memory space> [shape: f32[1], index: 0, kind: input, shape index: {}]   ;;  %s201_s1 = inlined_call_operand.<no memory space> [shape: f32[1], index: 1, kind: input, shape index: {}]   ;;  %s202_s2 = inlined_call_operand.hbm [shape: f32[8,1024], index: 2, kind: input, shape index: {}]   ;;  %s203_s3 = inlined_call_operand.hbm [shape: f32[8,1024], index: 3, kind: output, shape index: {}]  }
   0x1   :  { %11 = vsyncpa [#allocation6], 0  ;;  %s166_s12 = smov [#allocation4]  }
   0x2   :  { %s22_s13 = sshll.u32 %s166_s12, 4  ;;  %s23_s13 = int_to_ptr.vmem [resolvable:$true] %s22_s13 }
   0x3   :  { %s130_s14 = scalar_lea.vmem %s23_s13, 1024  ;;  %p135_p1 = scmp.lt.s32.totalorder %s23_s13, %s23_s13 }
   0x4   :  { %p131_p0 = scmp.ne.s32.totalorder %s23_s13, %s130_s14  ;;  %p136_p2 = scmp.lt.s32.totalorder %s130_s14, %s130_s14 }
   0x6   :  { %p137_p3 = por %p136_p2, %p135_p1 }
   0x8   :  { %p138_p4 = pnand %p137_p3, %p131_p0 }
   0xa   :  { %141 = shalt.err (!%p138_p4)
}
   0xb   :  { %25 = dma.hbm_to_vmem [thread:$0]  %s202_s2, 1024, %s23_s13, [#allocation5]  }
   0xc   :  { %162 = dma.done.wait [#allocation5], 1024  }
   0xd   :  { %163 = vsyncadd [#allocation5], 4294966272  ;;  %v31_v0 = vld [vmem:[#allocation4] sm:$0xff]  ;;  %v32_v1 = vld [vmem:[#allocation4 + $0x8] sm:$0xff]  ;;  %v63_v24 = vstv %s200_s0  ;;  %v72_v26 = vstv %s201_s1  ;;  %s167_s0 = smov [#allocation7]  }
   0xe   :  { %v33_v2 = vld [vmem:[#allocation4 + $0x10] sm:$0xff]  ;;  %v39_v3 = vmul.f32 2.0, %v31_v0  ;;  %v40_v4 = vmul.f32 2.0, %v32_v1  ;;  %v34_v6 = vld [vmem:[#allocation4 + $0x18] sm:$0xff]  ;;  %v35_v7 = vld [vmem:[#allocation4 + $0x20] sm:$0xff]  ;;  %s95_s1 = sshll.u32 %s167_s0, 4  ;;  %s96_s1 = int_to_ptr.vmem [resolvable:$true] %s95_s1 }
   0xf   :  { %v41_v5 = vmul.f32 2.0, %v33_v2  ;;  %v36_v8 = vld [vmem:[#allocation4 + $0x28] sm:$0xff]  ;;  %v42_v9 = vmul.f32 2.0, %v34_v6  ;;  %v43_v10 = vmul.f32 2.0, %v35_v7  ;;  %v37_v12 = vld [vmem:[#allocation4 + $0x30] sm:$0xff]  ;;  %v38_v13 = vld [vmem:[#allocation4 + $0x38] sm:$0xff]  ;;  %p147_p6 = scmp.lt.s32.totalorder %s96_s1, %s96_s1 }
  0x10   :  { %v44_v11 = vmul.f32 2.0, %v36_v8  ;;  %v47_v14 = vmul.f32 1.442695, %v39_v3  ;;  %v49_v15 = vmul.f32 1.442695, %v40_v4  ;;  %v45_v19 = vmul.f32 2.0, %v37_v12 }
  0x11   :  { %v51_v16 = vmul.f32 1.442695, %v41_v5  ;;  %v53_v17 = vmul.f32 1.442695, %v42_v9  ;;  %v55_v18 = vmul.f32 1.442695, %v43_v10 }
  0x12   :  { %106 = vpow2.f32 %v47_v14  ;;  %v46_v20 = vmul.f32 2.0, %v38_v13  ;;  %v57_v21 = vmul.f32 1.442695, %v44_v11  ;;  %v59_v22 = vmul.f32 1.442695, %v45_v19  ;;  %s142_s20 = scalar_lea.vmem %s96_s1, 1024 }
  0x13   :  { %108 = vpow2.f32 %v49_v15  ;;  %p143_p5 = scmp.ne.s32.totalorder %s96_s1, %s142_s20  ;;  %p148_p7 = scmp.lt.s32.totalorder %s142_s20, %s142_s20 }
  0x14   :  { %110 = vpow2.f32 %v51_v16  ;;  %v61_v23 = vmul.f32 1.442695, %v46_v20 }
  0x15   :  { %112 = vpow2.f32 %v53_v17  ;;  %p149_p8 = por %p148_p7, %p147_p6 }
  0x16   :  { %114 = vpow2.f32 %v55_v18 }
  0x17   :  { %116 = vpow2.f32 %v57_v21  ;;  %p150_p9 = pnand %p149_p8, %p143_p5 }
  0x18   :  { %118 = vpow2.f32 %v59_v22 }
  0x19   :  { %120 = vpow2.f32 %v61_v23 }
  0x1f   :  { %v107_v25 = vpop.eup %106 }
  0x20   :  { %v109_v27 = vpop.eup %108  ;;  %v64_v28 = vmul.f32 %v107_v25, %v63_v24 }
  0x21   :  { %v111_v29 = vpop.eup %110  ;;  %v65_v30 = vmul.f32 %v109_v27, %v63_v24 }
  0x22   :  { %v113_v31 = vpop.eup %112  ;;  %v73_v32 = vadd.f32 %v72_v26, %v64_v28  ;;  %v66_v33 = vmul.f32 %v111_v29, %v63_v24 }
  0x23   :  { %v115_v34 = vpop.eup %114  ;;  %v74_v35 = vadd.f32 %v72_v26, %v65_v30  ;;  %v67_v36 = vmul.f32 %v113_v31, %v63_v24 }
  0x24   :  { %v117_v37 = vpop.eup %116  ;;  %81 = vst [vmem:[#allocation7] sm:$0xff] %v73_v32  ;;  %v75_v38 = vadd.f32 %v72_v26, %v66_v33  ;;  %v68_v39 = vmul.f32 %v115_v34, %v63_v24 }
  0x25   :  { %v119_v40 = vpop.eup %118  ;;  %82 = vst [vmem:[#allocation7 + $0x8] sm:$0xff] %v74_v35  ;;  %v76_v41 = vadd.f32 %v72_v26, %v67_v36  ;;  %v69_v42 = vmul.f32 %v117_v37, %v63_v24 }
  0x26   :  { %v121_v43 = vpop.eup %120  ;;  %83 = vst [vmem:[#allocation7 + $0x10] sm:$0xff] %v75_v38  ;;  %v77_v44 = vadd.f32 %v72_v26, %v68_v39  ;;  %v70_v45 = vmul.f32 %v119_v40, %v63_v24 }
  0x27   :  { %84 = vst [vmem:[#allocation7 + $0x18] sm:$0xff] %v76_v41  ;;  %v78_v46 = vadd.f32 %v72_v26, %v69_v42  ;;  %v71_v47 = vmul.f32 %v121_v43, %v63_v24 }
  0x28   :  { %85 = vst [vmem:[#allocation7 + $0x20] sm:$0xff] %v77_v44  ;;  %v79_v48 = vadd.f32 %v72_v26, %v70_v45 }
  0x29   :  { %86 = vst [vmem:[#allocation7 + $0x28] sm:$0xff] %v78_v46  ;;  %v80_v49 = vadd.f32 %v72_v26, %v71_v47 }
  0x2a   :  { %87 = vst [vmem:[#allocation7 + $0x30] sm:$0xff] %v79_v48 }
  0x2b   :  { %88 = vst [vmem:[#allocation7 + $0x38] sm:$0xff] %v80_v49 }
  0x2c   :  { %153 = shalt.err (!%p150_p9)
}
  0x2d   :  { %98 = dma.vmem_to_hbm [thread:$0]  %s96_s1, 1024, %s203_s3, [#allocation6]  }
  0x2e   :  { %164 = dma.done.wait [#allocation6], 1024  }
  0x2f   :  { %165 = vsyncadd [#allocation6], 4294966272 }
  0x30   :  { %102 = vsyncpa [#allocation5], 1 }
  0x31   :  { %103 = vsyncpa [#allocation6], 1 }

</bundles_post_ra>
